<compile_context>
chip_gen: v5e
topology: v5e:2x2
jax: 0.10.0
libtpu: 0.0.40
codegen_flags: <defaults>
</compile_context>

<pallas_src>
import functools
import numpy as np
import jax
import jax.numpy as jnp
from jax.experimental import pallas as pl
from jax.experimental.pallas import tpu as pltpu


_ACTIVATIONS = {
    'relu': lambda v: jnp.maximum(v, 0.0),
    'sigmoid': jax.nn.sigmoid,
    'tanh': jnp.tanh,
    'leaky_relu': lambda v: jnp.where(v >= 0, v, 0.01 * v),
    'elu': jax.nn.elu,
    'softplus': jax.nn.softplus,
    'mish': lambda v: v * jnp.tanh(jax.nn.softplus(v)),
    'identity': lambda v: v,
}

_LANE = 128
_SUBLANE = 8


def _round_up(n, m):
    return ((n + m - 1) // m) * m


def _mlp_kernel(*refs, num_linear, act, compute_dtype, act_low_precision):
    # refs = (x_ref, w0, b0, w1, b1, ..., o_ref)
    x_ref, o_ref = refs[0], refs[-1]
    wb = refs[1:-1]
    act_fn = _ACTIVATIONS[act]

    h = x_ref[...].astype(compute_dtype)              # (TB, in_p) MXU operand
    for li in range(num_linear):                      # static unroll over layers
        w = wb[2 * li][...]                           # (d_in_p, d_out_p) compute dtype
        b = wb[2 * li + 1][...]                       # (1, d_out_p) f32
        y = jnp.dot(h, w, preferred_element_type=jnp.float32) + b
        if li < num_linear - 1:
            if act_low_precision:
                # v6e/v7x: bf16 VPU/EUP — activate the value already headed to the MXU.
                h = act_fn(y.astype(compute_dtype))
            else:
                # v5e: no bf16 VPU/EUP — keep elementwise math in f32, cast once.
                h = act_fn(y).astype(compute_dtype)
        else:
            o_ref[...] = y.astype(o_ref.dtype)


def _low_precision_act_default():
    try:
        kind = jax.devices()[0].device_kind.lower()
    except Exception:
        return True
    # v5-class chips have no bf16 VPU/EUP path; keep activations in f32 there.
    return 'v5' not in kind


def mlp_forward(x, params, *, act='relu', batch_norm=True, eps=1e-5,
                block_b=512, use_bf16=True, act_low_precision=None):
    B, in_dim = x.shape
    out_dim = params['w_out'].shape[0]
    compute_dtype = jnp.bfloat16 if use_bf16 else jnp.float32
    if act_low_precision is None:
        act_low_precision = bool(use_bf16) and _low_precision_act_default()

    # ---- Fold eval-mode BatchNorm1d into the preceding Linear ----
    # y = (Wx + b) * s + t  =>  W' = s[:,None] * W,  b' = s*b + t
    # with s = gamma * rsqrt(var + eps), t = beta - mean * s
    mats = [(params['w_in'].T, params['b_in'])]
    for lyr in params['hidden']:
        w, b = lyr['w'], lyr['b']
        if batch_norm:
            scale = lyr['gamma'] * jax.lax.rsqrt(lyr['running_var'] + eps)
            w = w * scale[:, None]
            b = b * scale + (lyr['beta'] - lyr['running_mean'] * scale)
        mats.append((w.T, b))
    mats.append((params['w_out'].T, params['b_out']))
    num_linear = len(mats)

    # ---- Lane-dense padding: every feature dim -> multiple of 128 ----
    dims = [in_dim] + [w.shape[1] for w, _ in mats]
    dims_p = [_round_up(d, _LANE) for d in dims]
    in_p, out_p = dims_p[0], dims_p[-1]

    # ---- Batch tiling: big tile, multiple of 8, but keep >= 2 grid steps ----
    TB = max(_SUBLANE, (int(block_b) // _SUBLANE) * _SUBLANE)
    half_b = max(_SUBLANE, _round_up(-(-B // 2), _SUBLANE))   # ceil(B/2) rounded to 8
    TB = min(TB, half_b)
    B_pad = pl.cdiv(B, TB) * TB

    x_arg = x
    if B_pad != B or in_p != in_dim:
        x_arg = jnp.pad(x, ((0, B_pad - B), (0, in_p - in_dim)))

    args = [x_arg]
    in_specs = [pl.BlockSpec((TB, in_p), lambda i: (i, 0))]
    weight_bytes = 0
    for li, (w, b) in enumerate(mats):
        d_in_p, d_out_p = dims_p[li], dims_p[li + 1]
        w = jnp.pad(w, ((0, d_in_p - w.shape[0]), (0, d_out_p - w.shape[1])))
        b = jnp.pad(b, ((0, d_out_p - b.shape[0]),))
        w = w.astype(compute_dtype)                  # bf16 MXU operands
        b = b.reshape(1, -1).astype(jnp.float32)     # lane-major bias row, f32
        weight_bytes += int(w.size) * w.dtype.itemsize + int(b.size) * 4
        args += [w, b]
        # Grid-invariant operands: single-buffer so they don't cost 2x VMEM.
        in_specs += [
            pl.BlockSpec(w.shape, lambda i: (0, 0), pipeline_mode=pl.Buffered(1)),
            pl.BlockSpec(b.shape, lambda i: (0, 0), pipeline_mode=pl.Buffered(1)),
        ]

    # ---- VMEM budget: pipelined x/out (2 buffers each, f32) + resident weights
    #      + intermediate activation slack; clamp under v7x's 64 MiB physical. ----
    max_dim_p = max(dims_p)
    vmem_need = (2 * TB * (in_p + out_p) * 4
                 + weight_bytes
                 + 4 * TB * max_dim_p * 4)
    vmem_limit = int(min(max(vmem_need + (4 << 20), 16 << 20), 64 << 20))

    # ---- Scheduler hint ----
    flops = 2 * B_pad * sum(dims_p[i] * dims_p[i + 1] for i in range(num_linear))
    transcendentals = 0
    if act in ('sigmoid', 'tanh', 'elu', 'softplus', 'mish'):
        transcendentals = B_pad * sum(dims_p[1:-1])
    bytes_accessed = int(x_arg.size) * 4 + weight_bytes + B_pad * out_p * 4
    cost = pl.CostEstimate(flops=int(flops), transcendentals=int(transcendentals),
                           bytes_accessed=int(bytes_accessed))

    kernel = functools.partial(_mlp_kernel, num_linear=num_linear, act=act,
                               compute_dtype=compute_dtype,
                               act_low_precision=act_low_precision)

    out = pl.pallas_call(
        kernel,
        out_shape=jax.ShapeDtypeStruct((B_pad, out_p), x.dtype),
        grid=(B_pad // TB,),
        in_specs=in_specs,
        out_specs=pl.BlockSpec((TB, out_p), lambda i: (i, 0)),
        compiler_params=pltpu.CompilerParams(
            dimension_semantics=("parallel",),
            vmem_limit_bytes=vmem_limit),
        cost_estimate=cost,
    )(*args)
    return out[:B, :out_dim]


def init_params(key, in_dim, out_dim, hidden_dim=16, n_layers=1):
    # Mirrors nn.Linear default init; BatchNorm running stats randomized so the
    # correctness check is non-trivial.
    ks = iter(jax.random.split(key, 4 + 6 * n_layers))

    def u(shape, fan_in):
        bound = 1.0 / np.sqrt(fan_in)
        return jax.random.uniform(next(ks), shape, jnp.float32, -bound, bound)

    params = {
        'w_in': u((hidden_dim, in_dim), in_dim),
        'b_in': u((hidden_dim,), in_dim),
        'hidden': [],
    }
    for _ in range(n_layers):
        params['hidden'].append({
            'w': u((hidden_dim, hidden_dim), hidden_dim),
            'b': u((hidden_dim,), hidden_dim),
            'gamma': 1.0 + 0.3 * jax.random.normal(next(ks), (hidden_dim,), jnp.float32),
            'beta': 0.1 * jax.random.normal(next(ks), (hidden_dim,), jnp.float32),
            'running_mean': 0.1 * jax.random.normal(next(ks), (hidden_dim,), jnp.float32),
            'running_var': jax.random.uniform(next(ks), (hidden_dim,), jnp.float32, 0.5, 1.5),
        })
    params['w_out'] = u((out_dim, hidden_dim), hidden_dim)
    params['b_out'] = u((out_dim,), hidden_dim)
    return params


def reference(x, params, *, act='relu', batch_norm=True, eps=1e-5):
    # Pure-JAX f32 reference mirroring the PyTorch module (eval-mode BatchNorm).
    act_fn = _ACTIVATIONS[act]
    h = act_fn(x @ params['w_in'].T + params['b_in'])
    for lyr in params['hidden']:
        h = h @ lyr['w'].T + lyr['b']
        if batch_norm:
            h = (h - lyr['running_mean']) * jax.lax.rsqrt(lyr['running_var'] + eps)
            h = h * lyr['gamma'] + lyr['beta']
        h = act_fn(h)
    return h @ params['w_out'].T + params['b_out']


if __name__ == "__main__":
    B, in_dim, hidden_dim, out_dim, n_layers = 64, 32, 32, 16, 1
    key = jax.random.PRNGKey(0)
    kx, kp = jax.random.split(key)
    x = jax.random.normal(kx, (B, in_dim), jnp.float32)
    params = init_params(kp, in_dim, out_dim, hidden_dim, n_layers)

    out = mlp_forward(x, params, act='relu', batch_norm=True, use_bf16=True)
    out = jax.block_until_ready(out)

    ref = reference(x, params, act='relu', batch_norm=True)
    assert out.shape == (B, out_dim)
    # bf16 MXU operands with f32 accumulation -> small drift vs the pure-f32 reference.
    np.testing.assert_allclose(np.asarray(out), np.asarray(ref), rtol=3e-2, atol=3e-2)
    print("KERNEL_OK")
</pallas_src>

<mosaic_0001>
module attributes {stable_mosaic.version = 11 : i64} {
  func.func @_mlp_kernel(%arg0: i32, %arg1: memref<32x128xf32, #tpu.memory_space<vmem>>, %arg2: memref<128x128xbf16, #tpu.memory_space<vmem>>, %arg3: memref<1x128xf32, #tpu.memory_space<vmem>>, %arg4: memref<128x128xbf16, #tpu.memory_space<vmem>>, %arg5: memref<1x128xf32, #tpu.memory_space<vmem>>, %arg6: memref<128x128xbf16, #tpu.memory_space<vmem>>, %arg7: memref<1x128xf32, #tpu.memory_space<vmem>>, %arg8: memref<32x128xf32, #tpu.memory_space<vmem>>) attributes {dimension_semantics = [#tpu.dimension_semantics<parallel>], iteration_bounds = array<i64: 2>, scalar_prefetch = 0 : i64, scratch_operands = 0 : i64, tpu.core_type = #tpu.core_type<tc>, window_params = [{transform_indices = @transform_0, window_bounds = array<i64: 32, 128>}, {pipeline_mode = #tpu.pipeline_mode<synchronous>, transform_indices = @transform_1, window_bounds = array<i64: 128, 128>}, {pipeline_mode = #tpu.pipeline_mode<synchronous>, transform_indices = @transform_2, window_bounds = array<i64: 1, 128>}, {pipeline_mode = #tpu.pipeline_mode<synchronous>, transform_indices = @transform_3, window_bounds = array<i64: 128, 128>}, {pipeline_mode = #tpu.pipeline_mode<synchronous>, transform_indices = @transform_4, window_bounds = array<i64: 1, 128>}, {pipeline_mode = #tpu.pipeline_mode<synchronous>, transform_indices = @transform_5, window_bounds = array<i64: 128, 128>}, {pipeline_mode = #tpu.pipeline_mode<synchronous>, transform_indices = @transform_6, window_bounds = array<i64: 1, 128>}, {transform_indices = @transform_7, window_bounds = array<i64: 32, 128>}]} {
    %c0 = arith.constant 0 : index
    %c0_0 = arith.constant 0 : index
    %0 = vector.load %arg1[%c0, %c0_0] : memref<32x128xf32, #tpu.memory_space<vmem>>, vector<32x128xf32>
    %1 = arith.truncf %0 : vector<32x128xf32> to vector<32x128xbf16>
    %c0_1 = arith.constant 0 : index
    %c0_2 = arith.constant 0 : index
    %2 = vector.load %arg2[%c0_1, %c0_2] : memref<128x128xbf16, #tpu.memory_space<vmem>>, vector<128x128xbf16>
    %c0_3 = arith.constant 0 : index
    %c0_4 = arith.constant 0 : index
    %3 = vector.load %arg3[%c0_3, %c0_4] : memref<1x128xf32, #tpu.memory_space<vmem>>, vector<1x128xf32>
    %cst = arith.constant dense<0.000000e+00> : vector<32x128xf32>
    %4 = tpu.matmul %1, %2, %cst {dimension_numbers = #tpu.dot_dimension_numbers<[1], [0], [0], [1], [0, 0, 1, 1], [], []>} : vector<32x128xbf16>, vector<128x128xbf16>, vector<32x128xf32> -> vector<32x128xf32>
    %5 = vector.broadcast %3 : vector<1x128xf32> to vector<32x128xf32>
    %6 = arith.addf %4, %5 : vector<32x128xf32>
    %7 = arith.truncf %6 : vector<32x128xf32> to vector<32x128xbf16>
    %cst_5 = arith.constant 0.000000e+00 : bf16
    %8 = vector.broadcast %cst_5 : bf16 to vector<32x128xbf16>
    %9 = arith.maximumf %7, %8 : vector<32x128xbf16>
    %c0_6 = arith.constant 0 : index
    %c0_7 = arith.constant 0 : index
    %10 = vector.load %arg4[%c0_6, %c0_7] : memref<128x128xbf16, #tpu.memory_space<vmem>>, vector<128x128xbf16>
    %c0_8 = arith.constant 0 : index
    %c0_9 = arith.constant 0 : index
    %11 = vector.load %arg5[%c0_8, %c0_9] : memref<1x128xf32, #tpu.memory_space<vmem>>, vector<1x128xf32>
    %cst_10 = arith.constant dense<0.000000e+00> : vector<32x128xf32>
    %12 = tpu.matmul %9, %10, %cst_10 {dimension_numbers = #tpu.dot_dimension_numbers<[1], [0], [0], [1], [0, 0, 1, 1], [], []>} : vector<32x128xbf16>, vector<128x128xbf16>, vector<32x128xf32> -> vector<32x128xf32>
    %13 = vector.broadcast %11 : vector<1x128xf32> to vector<32x128xf32>
    %14 = arith.addf %12, %13 : vector<32x128xf32>
    %15 = arith.truncf %14 : vector<32x128xf32> to vector<32x128xbf16>
    %cst_11 = arith.constant 0.000000e+00 : bf16
    %16 = vector.broadcast %cst_11 : bf16 to vector<32x128xbf16>
    %17 = arith.maximumf %15, %16 : vector<32x128xbf16>
    %c0_12 = arith.constant 0 : index
    %c0_13 = arith.constant 0 : index
    %18 = vector.load %arg6[%c0_12, %c0_13] : memref<128x128xbf16, #tpu.memory_space<vmem>>, vector<128x128xbf16>
    %c0_14 = arith.constant 0 : index
    %c0_15 = arith.constant 0 : index
    %19 = vector.load %arg7[%c0_14, %c0_15] : memref<1x128xf32, #tpu.memory_space<vmem>>, vector<1x128xf32>
    %cst_16 = arith.constant dense<0.000000e+00> : vector<32x128xf32>
    %20 = tpu.matmul %17, %18, %cst_16 {dimension_numbers = #tpu.dot_dimension_numbers<[1], [0], [0], [1], [0, 0, 1, 1], [], []>} : vector<32x128xbf16>, vector<128x128xbf16>, vector<32x128xf32> -> vector<32x128xf32>
    %21 = vector.broadcast %19 : vector<1x128xf32> to vector<32x128xf32>
    %22 = arith.addf %20, %21 : vector<32x128xf32>
    %c0_17 = arith.constant 0 : index
    %c0_18 = arith.constant 0 : index
    %23 = vector.load %arg8[%c0_17, %c0_18] : memref<32x128xf32, #tpu.memory_space<vmem>>, vector<32x128xf32>
    tpu.vector_store %arg8[%c0_17, %c0_18], %22 {strides = array<i32>} : memref<32x128xf32, #tpu.memory_space<vmem>>, vector<32x128xf32>,
    return
  }
  func.func @transform_0(%arg0: i32) -> (i32, i32) {
    %c0_i32 = arith.constant 0 : i32
    %c0_i32_0 = arith.constant 0 : i32
    return %arg0, %c0_i32 : i32, i32
  }
  func.func @transform_1(%arg0: i32) -> (i32, i32) {
    %c0_i32 = arith.constant 0 : i32
    %c0_i32_0 = arith.constant 0 : i32
    %c0_i32_1 = arith.constant 0 : i32
    return %c0_i32, %c0_i32_0 : i32, i32
  }
  func.func @transform_2(%arg0: i32) -> (i32, i32) {
    %c0_i32 = arith.constant 0 : i32
    %c0_i32_0 = arith.constant 0 : i32
    %c0_i32_1 = arith.constant 0 : i32
    return %c0_i32, %c0_i32_0 : i32, i32
  }
  func.func @transform_3(%arg0: i32) -> (i32, i32) {
    %c0_i32 = arith.constant 0 : i32
    %c0_i32_0 = arith.constant 0 : i32
    %c0_i32_1 = arith.constant 0 : i32
    return %c0_i32, %c0_i32_0 : i32, i32
  }
  func.func @transform_4(%arg0: i32) -> (i32, i32) {
    %c0_i32 = arith.constant 0 : i32
    %c0_i32_0 = arith.constant 0 : i32
    %c0_i32_1 = arith.constant 0 : i32
    return %c0_i32, %c0_i32_0 : i32, i32
  }
  func.func @transform_5(%arg0: i32) -> (i32, i32) {
    %c0_i32 = arith.constant 0 : i32
    %c0_i32_0 = arith.constant 0 : i32
    %c0_i32_1 = arith.constant 0 : i32
    return %c0_i32, %c0_i32_0 : i32, i32
  }
  func.func @transform_6(%arg0: i32) -> (i32, i32) {
    %c0_i32 = arith.constant 0 : i32
    %c0_i32_0 = arith.constant 0 : i32
    %c0_i32_1 = arith.constant 0 : i32
    return %c0_i32, %c0_i32_0 : i32, i32
  }
  func.func @transform_7(%arg0: i32) -> (i32, i32) {
    %c0_i32 = arith.constant 0 : i32
    %c0_i32_0 = arith.constant 0 : i32
    return %arg0, %c0_i32 : i32, i32
  }
}

</mosaic_0001>

<bundles_post_ra>
// kernel: tpu_custom_call.1
= control target key start
LH: loop header
LB: loop body
LE: loop exit
PB: predicated region body
PF: predicated region fallthrough
CT: control target
= control target key end

     0   :  { %s1428_s0 = inlined_call_operand.hbm [shape: f32[64,128], index: 0, kind: input, shape index: {}]   ;;  %s1429_s1 = inlined_call_operand.hbm [shape: bf16[128,128], index: 1, kind: input, shape index: {}]   ;;  %s1430_s2 = inlined_call_operand.vmem [shape: f32[1,128], index: 2, kind: input, shape index: {}]   ;;  %s1431_s3 = inlined_call_operand.hbm [shape: bf16[128,128], index: 3, kind: input, shape index: {}]   ;;  %s1432_s4 = inlined_call_operand.vmem [shape: f32[1,128], index: 4, kind: input, shape index: {}]   ;;  %s1433_s5 = inlined_call_operand.hbm [shape: bf16[128,128], index: 5, kind: input, shape index: {}]   ;;  %s1434_s6 = inlined_call_operand.vmem [shape: f32[1,128], index: 6, kind: input, shape index: {}]   ;;  %s1435_s7 = inlined_call_operand.hbm [shape: f32[64,128], index: 7, kind: output, shape index: {}]  }
   0x1   :  { %1436 = sst [smem:[#allocation15_spill]] %s1429_s1 }
   0x2   :  { %12 = vsyncpa [#allocation3], 0 }
   0x3   :  { %14 = vsyncpa [#allocation3 + $0x1], 0 }
   0x4   :  { %15 = vsyncpa [#allocation6], 0 }
   0x5   :  { %16 = vsyncpa [#allocation9], 0 }
   0x6   :  { %17 = vsyncpa [#allocation4], 0 }
   0x7   :  { %19 = vsyncpa [#allocation4 + $0x1], 0  ;;  %s1249_s24 = smov 0   ;;  %s1251_s25 = smov 0  }
   0x8   :  { %s1253_s26 = smov 0   ;;  %s1255_s27 = smov 0  }
   0x9 LB: > { %s1270_s28 = sadd.s32 4294967295, %s1198_s27   ;;  %s768_s29 = sadd.s32 4294967294, %s1198_s27   ;;  %s1198_s27 = sphi %s1255_s27, %s1448_s27   ;;  %s1194_s26 = sphi %s1253_s26, %s1447_s26   ;;  %s1190_s25 = sphi %s1251_s25, %s1446_s25   ;;  %s1186_s24 = sphi %s1249_s24, %s1445_s24  }
   0xa   : > { %p45_p0 = scmp.ne.s32.totalorder %s1190_s25, %s1186_s24  ;;  %p46_p1 = scmp.eq.s32.totalorder %s1270_s28, 0 }
   0xb   : > { %p195_p2 = scmp.eq.s32.totalorder %s1270_s28, 1  ;;  %p201_p3 = scmp.eq.s32.totalorder %s768_s29, 1 }
   0xc   : > { %p1279_p4 = por %p46_p1, %p45_p0  ;;  %p769_p5 = scmp.ge.s32.totalorder %s1198_s27, 1 }
   0xd   : > { %p1284_p6 = por %p201_p3, %p45_p0  ;;  %p208_p7 = scmp.lt.s32.totalorder %s1198_s27, 3 }
   0xe   : > { %s1439_s1 = sld [smem:[#allocation15_spill]]  ;;  %s1200_s13 = smov [#allocation5]  }
   0xf   : > { %p1292_p8 = pnand %p769_p5, %p208_p7  ;;  %s221_s14 = sshll.u32 %s1200_s13, 4  ;;  %s222_s14 = int_to_ptr.vmem [resolvable:$true] %s221_s14 }
  0x10   : > { %s236_s18 = sshll.u32 %s1431_s3, 4  ;;  %s1201_s19 = smov 64   ;;  %s237_s18 = int_to_ptr.hbm [resolvable:$true] %s236_s18 }
  0x11   : > { %p934_p9 = pneg %p1292_p8  ;;  %s1202_s20 = smov 4  }
  0x12   : > { %s1203_s21 = smov [#allocation7]   ;;  %s253_s9 = sshll.u32 %s1433_s5, 4  ;;  %s254_s9 = int_to_ptr.hbm [resolvable:$true] %s253_s9 }
  0x13   : > { %p1300_p10 = pnand %p934_p9, %p46_p1  ;;  %s238_s22 = sshll.u32 %s1203_s21, 4  ;;  %s239_s22 = int_to_ptr.vmem [resolvable:$true] %s238_s22 }
  0x14   : > { %s219_s11 = sshll.u32 %s1439_s1, 4  ;;  %s1204_s10 = smov [#allocation8]   ;;  %s220_s11 = int_to_ptr.hbm [resolvable:$true] %s219_s11 }
  0x15   : > { %937 = dma.hbm_to_vmem [thread:$0]  (!%p1300_p10), %s220_s11, 1024, %s222_s14, [#allocation6], %s1201_s19, %s1201_s19, %s1202_s20  }
  0x16   : > { %940 = dma.hbm_to_vmem [thread:$0]  (!%p1300_p10), %s237_s18, 1024, %s239_s22, [#allocation6], %s1201_s19, %s1201_s19, %s1202_s20  }
  0x17   : > { %s255_s13 = sshll.u32 %s1204_s10, 4  ;;  %s1316_s11 = sadd.s32 1, %s1198_s27   ;;  %s256_s13 = int_to_ptr.vmem [resolvable:$true] %s255_s13 }
  0x18   : > { %943 = dma.hbm_to_vmem [thread:$0]  (!%p1300_p10), %s254_s9, 1024, %s256_s13, [#allocation9], %s1201_s19, %s1201_s19, %s1202_s20  }
  0x19   : > { %s29_s14 = ssub.s32 %s1198_s27, %s1316_s11  ;;  %s32_s16 = sadd.s32 1, %s1194_s26 }
  0x1a   : > { %p30_p12 = scmp.eq.s32.totalorder %s29_s14, 0  ;;  %p39_p13 = scmp.ne.s32.totalorder %s1194_s26, %s1190_s25 }
  0x1b   : > { %p40_p0 = scmp.eq.s32.totalorder %s1198_s27, 0  ;;  %p955_p3 = scmp.lt.s32.totalorder %s1198_s27, 2 }
  0x1c   : > { %s1328_s17 = scalar_select %p30_p12, %s1194_s26, %s32_s16  }
  0x1d   : > { %p41_p5 = por %p40_p0, %p39_p13  ;;  %p1332_p7 = por %p195_p2, %p39_p13 }
  0x1e   : > { %s272_s21 = sand.u32 1, %s1194_s26   ;;  %s884_s22 = sshll.u32 %s1198_s27, 5 }
  0x1f   : > { %s774_s15 = sshll.u32 %s272_s21, 5  ;;  %s281_s20 = scalar_lea.hbm %s1428_s0, %s884_s22 }
  0x20   : > { %s282_s29 = sshll.u32 %s281_s20, 4  ;;  %s276_s9 = scalar_lea.vmem [#allocation2], %s774_s15  ;;  %s283_s29 = int_to_ptr.hbm [resolvable:$true] %s282_s29 }
  0x21   : > { %s284_s10 = sshll.u32 %s276_s9, 4  ;;  %p1343_p9 = pnand %p955_p3, %p41_p5  ;;  %s285_s10 = int_to_ptr.vmem [resolvable:$true] %s284_s10 }
  0x22   : > { %s273_s14 = scalar_lea.sflag [#allocation3], %s272_s21  ;;  %s1094_s16 = sshra.s32 %s283_s29, 4  ;;  %s1095_s16 = int_to_ptr.hbm [resolvable:$true] %s1094_s16 }
  0x23   : > { %s1096_s1 = scalar_lea.hbm %s1095_s16, 32  ;;  %p1098_p10 = pneg %p1343_p9 }
  0x24   : > { %p1097_p2 = scmp.ne.s32.totalorder %s1095_s16, %s1096_s1  ;;  %s1101_s23 = scalar_lea.hbm %s1428_s0, 64 }
  0x25   : > { %p1102_p0 = scmp.lt.s32.totalorder %s1095_s16, %s1428_s0  ;;  %p1103_p3 = scmp.lt.s32.totalorder %s1101_s23, %s1096_s1 }
  0x26   : > { %p1099_p12 = pnand %p1098_p10, %p1097_p2 }
  0x27   : > { %p1104_p5 = por %p1103_p3, %p1102_p0 }
  0x28   : > { %p1100_p13 = pneg %p1099_p12 }
  0x2a   : > { %p1105_p11 = pnand %p1104_p5, %p1100_p13 }
  0x2c   : > { %1108 = shalt.err (!%p1105_p11)
}
  0x2d   : > { %s1205_s21 = smov 128   ;;  %s1206_s9 = smov 8  }
  0x2e   : > { %947 = dma.hbm_to_vmem [thread:$0]  (!%p1343_p9), %s283_s29, 512, %s285_s10, %s273_s14, %s1205_s21, %s1205_s21, %s1206_s9  }
  0x2f   : > { %296 = sbr.rel (%p1292_p8) target bundleno = 531 (0x213), region = 48  ;;  %s1360_s22 = sand.u32 (!%p1292_p8), 1, %s1190_s25  }
  0x30   : > { %s778_s16 = sshll.u32 (!%p1292_p8), %s1360_s22, 5  ;;  %s299_s1 = scalar_lea.sflag (!%p1292_p8), [#allocation3], %s1360_s22 }
  0x31   : > { %s1366_s15 = scalar_lea.vmem (!%p1292_p8), [#allocation2], %s778_s16 }
  0x34   : > { %1169 = dma.done.wait (%p1279_p4), %s299_s1, 512  }
  0x35   : > { %1171 = vsyncadd (%p1279_p4), %s299_s1, 4294966784 }
  0x36   : > { %1173 = dma.done.wait (%p46_p1), [#allocation6], 2048  }
  0x37   : > { %1175 = vsyncadd (%p46_p1), [#allocation6], 4294965248 }
  0x38   : > { %1177 = dma.done.wait (%p46_p1), [#allocation9], 1024  }
  0x39   : > { %1179 = vsyncadd (%p46_p1), [#allocation9], 4294966272  ;;  %v892_v0 = vld [vmem:[#allocation5 + $0x38] sm:$0xff]  ;;  %v891_v1 = vld [vmem:[#allocation5 + $0x30] sm:$0xff]  ;;  %s348_s23 = scalar_lea.vmem [#allocation10], %s778_s16  ;;  %s909_s19 = sshll.u32 %s1270_s28, 5 }
  0x3a   : > { %425 = vmatpush.bf16.msra.mxu0 %v892_v0  ;;  %910 = vmatpush.bf16.msra.mxu3 %v892_v0  ;;  %v900_v2 = vld [vmem:[#allocation7 + $0x38] sm:$0xff]  ;;  %v890_v3 = vld [vmem:[#allocation5 + $0x28] sm:$0xff]  ;;  %v899_v4 = vld [vmem:[#allocation7 + $0x30] sm:$0xff]  ;;  %s662_s9 = scalar_lea.hbm %s1435_s7, %s909_s19  ;;  %s663_s1 = sshll.u32 %s348_s23, 4  ;;  %s664_s1 = int_to_ptr.vmem [resolvable:$true] %s663_s1 }
  0x3b   : > { %526 = vmatpush.bf16.msra.mxu1 %v900_v2  ;;  %v889_v5 = vld [vmem:[#allocation5 + $0x20] sm:$0xff]  ;;  %v898_v6 = vld [vmem:[#allocation7 + $0x28] sm:$0xff]  ;;  %v888_v7 = vld [vmem:[#allocation5 + $0x18] sm:$0xff]  ;;  %s651_s16 = scalar_lea.sflag [#allocation4], %s1360_s22  ;;  %s1144_s10 = scalar_lea.hbm %s1435_s7, 64 }
  0x3c   : > { %v897_v8 = vld [vmem:[#allocation7 + $0x20] sm:$0xff]  ;;  %v887_v9 = vld [vmem:[#allocation5 + $0x10] sm:$0xff]  ;;  %v886_v10 = vld [vmem:[#allocation5 + $0x8] sm:$0xff] }
  0x3d   : > { %v885_v11 = vld [vmem:[#allocation5] sm:$0xff]  ;;  %v352_v13 = vld [vmem:[%s1366_s15 + $0x8] sm:$0xff]  ;;  %v353_v14 = vld [vmem:[%s1366_s15 + $0x10] sm:$0xff] }
  0x3e   : > { %426 = vmatpush.bf16.msra.mxu0 %v891_v1  ;;  %911 = vmatpush.bf16.msra.mxu3 %v891_v1  ;;  %v351_v12 = vld [vmem:[%s1366_s15] sm:$0xff]  ;;  %v354_v15 = vld [vmem:[%s1366_s15 + $0x18] sm:$0xff]  ;;  %v895_v19 = vld [vmem:[#allocation7 + $0x10] sm:$0xff]  ;;  %s665_s15 = sshll.u32 %s662_s9, 4  ;;  %s666_s15 = int_to_ptr.hbm [resolvable:$true] %s665_s15 }
  0x3f   : > { %527 = vmatpush.bf16.msra.mxu1 %v899_v4  ;;  %v355_v16 = vpack.c.bf16 %v352_v13, %v351_v12  ;;  %v356_v17 = vpack.c.bf16 %v354_v15, %v353_v14  ;;  %v896_v18 = vld [vmem:[#allocation7 + $0x18] sm:$0xff]  ;;  %v894_v20 = vld [vmem:[#allocation7 + $0x8] sm:$0xff]  ;;  %v893_v21 = vld [vmem:[#allocation7] sm:$0xff]  ;;  %s1138_s30 = sshra.s32 %s666_s15, 4  ;;  %s1139_s30 = int_to_ptr.hbm [resolvable:$true] %s1138_s30 }
  0x40   : > { %v908_v22 = vld [vmem:[#allocation8 + $0x38] sm:$0xff]  ;;  %v907_v24 = vld [vmem:[#allocation8 + $0x30] sm:$0xff]  ;;  %v1001_v25 = vld [vmem:[%s1430_s2] ss:$0 sm:$0xff]  ;;  %s1140_s12 = scalar_lea.hbm %s1139_s30, 32  ;;  %p1145_p11 = scmp.lt.s32.totalorder %s1139_s30, %s1435_s7 }
  0x41   : > { %627 = vmatpush.bf16.msra.mxu2 %v908_v22  ;;  %v906_v26 = vld [vmem:[#allocation8 + $0x28] sm:$0xff]  ;;  %v905_v31 = vld [vmem:[#allocation8 + $0x20] sm:$0xff]  ;;  %v904_v41 = vld [vmem:[#allocation8 + $0x18] sm:$0xff]  ;;  %p1141_p1 = scmp.ne.s32.totalorder %s1139_s30, %s1140_s12  ;;  %p1146_p9 = scmp.lt.s32.totalorder %s1144_s10, %s1140_s12 }
  0x42   : > { %427 = vmatpush.bf16.msra.mxu0 %v890_v3  ;;  %912 = vmatpush.bf16.msra.mxu3 %v890_v3  ;;  %v903_v42 = vld [vmem:[#allocation8 + $0x10] sm:$0xff]  ;;  %v902_v43 = vld [vmem:[#allocation8 + $0x8] sm:$0xff]  ;;  %v901_v44 = vld [vmem:[#allocation8] sm:$0xff] }
  0x43   : > { %528 = vmatpush.bf16.msra.mxu1 %v898_v6  ;;  %v1002_v46 = vld [vmem:[%s1432_s4] ss:$0 sm:$0xff]  ;;  %p1142_p4 = pnand %p1141_p1, %p1332_p7  ;;  %p1147_p2 = por %p1146_p9, %p1145_p11 }
  0x44   : > { %v1003_v60 = vld [vmem:[%s1434_s6] ss:$0 sm:$0xff] }
  0x45   : > { %628 = vmatpush.bf16.msra.mxu2 %v907_v24  ;;  %p1143_p8 = pneg %p1142_p4 }
  0x46   : > { %428 = vmatpush.bf16.msra.mxu0 %v889_v5  ;;  %913 = vmatpush.bf16.msra.mxu3 %v889_v5 }
  0x47   : > { %529 = vmatpush.bf16.msra.mxu1 %v897_v8  ;;  %p1148_p10 = pnand %p1147_p2, %p1143_p8 }
  0x49   : > { %629 = vmatpush.bf16.msra.mxu2 %v906_v26 }
  0x4a   : > { %429 = vmatpush.bf16.msra.mxu0 %v888_v7  ;;  %914 = vmatpush.bf16.msra.mxu3 %v888_v7 }
  0x4b   : > { %530 = vmatpush.bf16.msra.mxu1 %v896_v18 }
  0x4d   : > { %630 = vmatpush.bf16.msra.mxu2 %v905_v31 }
  0x4e   : > { %430 = vmatpush.bf16.msra.mxu0 %v887_v9  ;;  %915 = vmatpush.bf16.msra.mxu3 %v887_v9 }
  0x4f   : > { %531 = vmatpush.bf16.msra.mxu1 %v895_v19 }
  0x51   : > { %631 = vmatpush.bf16.msra.mxu2 %v904_v41 }
  0x52   : > { %431 = vmatpush.bf16.msra.mxu0 %v886_v10  ;;  %916 = vmatpush.bf16.msra.mxu3 %v886_v10 }
  0x53   : > { %532 = vmatpush.bf16.msra.mxu1 %v894_v20 }
  0x55   : > { %632 = vmatpush.bf16.msra.mxu2 %v903_v42 }
  0x56   : > { %432 = vmatpush.bf16.msra.mxu0 %v885_v11  ;;  %917 = vmatpush.bf16.msra.mxu3 %v885_v11 }
  0x57   : > { %533 = vmatpush.bf16.msra.mxu1 %v893_v21 }
  0x59   : > { %433 = vmatmul.bf16.vlgmr.msra.gmra.mxu0 %v355_v16  ;;  %438 = vmatmul.bf16.vlgmr.msra.gmra.mxu3 %v356_v17 }
  0x5a   : > { %633 = vmatpush.bf16.msra.mxu2 %v902_v43 }
  0x5e   : > { %634 = vmatpush.bf16.msra.mxu2 %v901_v44 }
  0xd6   : > { %v434_v23 = vpop.f32.mrf.mxu0 }
  0xd7   : > { %v435_v27 = vadd.f32 %v1001_v25, %v434_v23 }
  0xd9   : > { %v452_v32 = vmax.f32 %v435_v27, 0.0 }
  0xdc   : > { %v439_v29 = vpop.f32.mrf.mxu3 }
  0xdd   : > { %v440_v36 = vadd.f32 %v1001_v25, %v439_v29 }
  0xde   : > { %v436_v28 = vpop.f32.mrf.mxu0 }
  0xdf   : > { %v437_v30 = vadd.f32 %v1001_v25, %v436_v28  ;;  %v454_v38 = vmax.f32 %v440_v36, 0.0 }
  0xe1   : > { %v453_v33 = vmax.f32 %v437_v30, 0.0 }
  0xe3   : > { %v456_v34 = vpack.c.bf16 %v453_v33, %v452_v32 }
  0xe4   : > { %v441_v35 = vpop.f32.mrf.mxu3 }
  0xe5   : > { %534 = vmatmul.bf16.vlgmr.msra.gmra.mxu1 %v456_v34  ;;  %v442_v37 = vadd.f32 %v1001_v25, %v441_v35 }
  0xe7   : > { %v455_v39 = vmax.f32 %v442_v37, 0.0 }
  0xe9   : > { %v457_v40 = vpack.c.bf16 %v455_v39, %v454_v38 }
  0xf5   : > { %539 = vmatmul.bf16.gmra.mxu1 %v457_v40 }
 0x162   : > { %v535_v45 = vpop.f32.mrf.mxu1 }
 0x163   : > { %v536_v47 = vadd.f32 %v1002_v46, %v535_v45 }
 0x165   : > { %v553_v50 = vmax.f32 %v536_v47, 0.0 }
 0x16a   : > { %v537_v48 = vpop.f32.mrf.mxu1 }
 0x16b   : > { %v538_v49 = vadd.f32 %v1002_v46, %v537_v48 }
 0x16d   : > { %v554_v51 = vmax.f32 %v538_v49, 0.0 }
 0x16f   : > { %v557_v52 = vpack.c.bf16 %v554_v51, %v553_v50 }
 0x171   : > { %635 = vmatmul.bf16.vlgmr.msra.gmra.mxu2 %v557_v52 }
 0x172   : > { %v540_v53 = vpop.f32.mrf.mxu1 }
 0x173   : > { %v541_v54 = vadd.f32 %v1002_v46, %v540_v53 }
 0x175   : > { %v555_v57 = vmax.f32 %v541_v54, 0.0 }
 0x17a   : > { %v542_v55 = vpop.f32.mrf.mxu1 }
 0x17b   : > { %v543_v56 = vadd.f32 %v1002_v46, %v542_v55 }
 0x17d   : > { %v556_v58 = vmax.f32 %v543_v56, 0.0 }
 0x17f   : > { %v558_v59 = vpack.c.bf16 %v556_v58, %v555_v57 }
 0x181   : > { %640 = vmatmul.bf16.gmra.mxu2 %v558_v59 }
 0x1f4   : > { %v636_v61 = vpop.f32.mrf.mxu2 }
 0x1f5   : > { %v637_v62 = vadd.f32 %v1003_v60, %v636_v61 }
 0x1f7   : > { %646 = vst [vmem:[%s348_s23] sm:$0xff] %v637_v62 }
 0x1fc   : > { %v638_v63 = vpop.f32.mrf.mxu2 }
 0x1fd   : > { %v639_v0 = vadd.f32 %v1003_v60, %v638_v63 }
 0x1ff   : > { %647 = vst [vmem:[%s348_s23 + $0x8] sm:$0xff] %v639_v0 }
 0x204   : > { %v641_v1 = vpop.f32.mrf.mxu2 }
 0x205   : > { %v642_v2 = vadd.f32 %v1003_v60, %v641_v1 }
 0x207   : > { %648 = vst [vmem:[%s348_s23 + $0x10] sm:$0xff] %v642_v2 }
 0x20c   : > { %v643_v3 = vpop.f32.mrf.mxu2 }
 0x20d   : > { %v644_v4 = vadd.f32 %v1003_v60, %v643_v3 }
 0x20f   : > { %649 = vst [vmem:[%s348_s23 + $0x18] sm:$0xff] %v644_v4 }
 0x210   : > { %1151 = shalt.err (!%p1148_p10)
}
 0x211   : > { %s1207_s22 = smov 128   ;;  %s1208_s23 = smov 8  }
 0x212   : > { %932 = dma.vmem_to_hbm [thread:$0]  (%p1332_p7), %s664_s1, 512, %s666_s15, %s651_s16, %s1207_s22, %s1207_s22, %s1208_s23  }
 0x213 PF: > { %s680_s19 = sand.u32 1, %s1186_s24   ;;  %p1444_p12 = scmp.ge.s32.totalorder %s1198_s27, 2 }
 0x214   : > { %s681_s20 = scalar_lea.sflag [#allocation4], %s680_s19 }
 0x215   : > { %p949_p13 = pnand %p1444_p12, %p1284_p6 }
 0x217   : > { %p950_p0 = pneg %p949_p13 }
 0x219   : > { %1181 = dma.done.wait (%p950_p0), %s681_s20, 512  }
 0x21a   : > { %1183 = vsyncadd (%p950_p0), %s681_s20, 4294966784  ;;  %p22_p3 = scmp.ge.s32.totalorder %s1316_s11, 4   ;;  %s1445_s24 = smov %s1190_s25 }
 0x21b   : > { %s1446_s25 = smov %s1194_s26  ;;  %s1447_s26 = smov %s1328_s17 }
 0x21c   : > { %s1448_s27 = smov %s1316_s11  ;;  %24 = sbr.rel (!%p22_p3) target bundleno = 9 (0x9), region = 105 }
 0x221   :  { %687 = vsyncpa [#allocation3], 1 }
 0x222   :  { %689 = vsyncpa [#allocation3 + $0x1], 1 }
 0x223   :  { %690 = vsyncpa [#allocation6], 1 }
 0x224   :  { %691 = vsyncpa [#allocation9], 1 }
 0x225   :  { %692 = vsyncpa [#allocation4], 1 }
 0x226   :  { %694 = vsyncpa [#allocation4 + $0x1], 1 }

</bundles_post_ra>
